<compile_context>
chip_gen: v7x
topology: tpu7x:2x2x1
jax: 0.10.0
libtpu: 0.0.40
codegen_flags: <defaults>
</compile_context>

<pallas_src>
import functools

import jax
import jax.numpy as jnp
from jax.experimental import pallas as pl
from jax.experimental.pallas import tpu as pltpu

EPS = 1e-5
BLOCK_M = 2048                      # im2col rows per grid step (multiple of 16)
VMEM_BUDGET_BYTES = 44 << 20        # double-buffered working-set budget (v7x safe)


def _round_up(x, n):
    return (x + n - 1) // n * n


# ----------------------------------------------------------------------------
# Kernels
# ----------------------------------------------------------------------------
def _proj_stats_kernel(p_ref, w_ref, y_ref, stats_ref):
    # p_ref: [tm, Kp] bf16 patches; w_ref: [Kp, Ep] bf16 weight.
    # y_ref: [tm, Ep] bf16 un-normalized projection (reused by phase B, so the
    #        matmul / patch read is never repeated).
    # stats_ref: [1, 2, Ep] f32 per-tile partial (sum, sum-of-squares).
    y = jnp.dot(p_ref[...], w_ref[...], preferred_element_type=jnp.float32)
    y_ref[...] = y.astype(y_ref.dtype)
    # Direct sub-slice stores (no concatenate relayout).
    stats_ref[0, 0:1, :] = jnp.sum(y, axis=0, keepdims=True)
    stats_ref[0, 1:2, :] = jnp.sum(y * y, axis=0, keepdims=True)


def _bn_apply_kernel(y_ref, scale_ref, shift_ref, o_ref):
    # Pure elementwise fused BN affine: o = y * scale + shift (f32 math).
    o_ref[...] = y_ref[...].astype(jnp.float32) * scale_ref[...] + shift_ref[...]


# ----------------------------------------------------------------------------
# Wrapper-side helpers
# ----------------------------------------------------------------------------
def _im2col_nchw_bf16(x, patch_size, stride, pad):
    """x: [N, C, H, W] -> bf16 patches [N*OH*OW, C*kh*kw] (channel-major, matching
    weight[E, C, kh, kw].reshape(E, -1))."""
    n, c, h, w = x.shape
    oh = (h + 2 * pad - patch_size) // stride + 1
    ow = (w + 2 * pad - patch_size) // stride + 1
    # Cast to bf16 *before* the 49-tap extraction: the patch stream is the
    # dominant HBM traffic (~3x the input for k=7/s=4), so it is materialized
    # exactly once, already in bf16.
    x_nhwc = jnp.transpose(x, (0, 2, 3, 1)).astype(jnp.bfloat16)     # [N, H, W, C]
    xp = jnp.pad(x_nhwc, ((0, 0), (pad, pad), (pad, pad), (0, 0)))
    taps = []
    for kh in range(patch_size):
        for kw in range(patch_size):
            sl = xp[:, kh:kh + (oh - 1) * stride + 1:stride,
                    kw:kw + (ow - 1) * stride + 1:stride, :]         # [N, OH, OW, C]
            taps.append(sl)
    patches = jnp.stack(taps, axis=0)                                # [T, N, OH, OW, C]
    patches = jnp.transpose(patches, (1, 2, 3, 4, 0))                # [N, OH, OW, C, T]
    patches = patches.reshape(n * oh * ow, c * patch_size * patch_size)
    return patches, oh, ow


def _phase_a_vmem(tm, kp, ep):
    # double-buffered: patches tile (bf16) + weight (bf16) + y tile (bf16)
    # + per-tile stats (f32)
    return 2 * (tm * kp * 2 + kp * ep * 2 + tm * ep * 2 + 2 * ep * 4)


def _phase_b_vmem(tm, ep):
    # double-buffered: y tile (bf16) + scale/shift (f32) + out tile (f32)
    return 2 * (tm * ep * 2 + 2 * ep * 4 + tm * ep * 4)


def _pick_tile_m(m, kp, ep):
    tm_full = _round_up(m, 16)                 # multiple of 16: bf16 sublane packing
    tm = min(BLOCK_M, tm_full)
    # Shrink until the double-buffered working set fits the explicit VMEM budget
    # (v7x has only 64 MiB per TensorCore).
    while tm > 16 and max(_phase_a_vmem(tm, kp, ep),
                          _phase_b_vmem(tm, ep)) > VMEM_BUDGET_BYTES:
        tm = max(16, _round_up(tm // 2, 16))
    # Prefer >= 2 row tiles so the "parallel" grid axis can shard across both
    # TensorCores on v7x instead of leaving one idle.
    if tm >= tm_full and tm > 16:
        tm = max(16, _round_up(-(-m // 2), 16))
    return tm


# ----------------------------------------------------------------------------
# Forward
# ----------------------------------------------------------------------------
@functools.partial(jax.jit, static_argnums=(4, 5))
def _overlap_patch_embed_impl(x, weight, gamma, beta, patch_size, stride):
    n, c, h, w = x.shape
    e = weight.shape[0]
    pad = patch_size // 2

    patches, oh, ow = _im2col_nchw_bf16(x, patch_size, stride, pad)   # bf16 [M, K]
    m, k = patches.shape

    # K padded only to the bf16 sublane quantum (16), NOT to 128: padding the
    # lane dim of the dominant patch stream to 128 would inflate its HBM bytes
    # by up to ~74% (C=3); Mosaic handles the unaligned contraction on-chip.
    kp = _round_up(k, 16)
    # E kept as one lane-dense block: >=256-wide once E is large so the
    # 2x256^2 MXUs on v6e/v7x are fully fed; 128 otherwise.
    ep = _round_up(e, 256) if e > 128 else 128

    tm = _pick_tile_m(m, kp, ep)
    mp = _round_up(m, tm)
    n_tiles = mp // tm

    patches_p = patches
    if (mp, kp) != (m, k):
        patches_p = jnp.pad(patches, ((0, mp - m), (0, kp - k)))      # zeros

    w_flat = weight.reshape(e, k).T.astype(jnp.bfloat16)              # [K, E]
    w_p = jnp.zeros((kp, ep), jnp.bfloat16).at[:k, :e].set(w_flat)
    gamma_p = jnp.ones((ep,), jnp.float32).at[:e].set(gamma.astype(jnp.float32))
    beta_p = jnp.zeros((ep,), jnp.float32).at[:e].set(beta.astype(jnp.float32))
    # NOTE: conv bias omitted on purpose — a per-channel constant cancels
    # exactly in (y - mean) under training-mode BatchNorm.

    vmem_limit = int(min(max(_phase_a_vmem(tm, kp, ep), _phase_b_vmem(tm, ep))
                         + (8 << 20), 52 << 20))
    cparams = pltpu.CompilerParams(dimension_semantics=("parallel",),
                                   vmem_limit_bytes=vmem_limit)

    # ---- Phase A: single matmul per tile -> y (bf16) + partial BN stats ----
    y_flat, partials = pl.pallas_call(
        _proj_stats_kernel,
        out_shape=(jax.ShapeDtypeStruct((mp, ep), jnp.bfloat16),
                   jax.ShapeDtypeStruct((n_tiles, 2, ep), jnp.float32)),
        grid=(n_tiles,),
        in_specs=[
            pl.BlockSpec((tm, kp), lambda i: (i, 0)),
            pl.BlockSpec((kp, ep), lambda i: (0, 0)),
        ],
        out_specs=(
            pl.BlockSpec((tm, ep), lambda i: (i, 0)),
            pl.BlockSpec((1, 2, ep), lambda i: (i, 0, 0)),
        ),
        compiler_params=cparams,
    )(patches_p, w_p)

    # Reduce the tiny [n_tiles, 2, Ep] partials; padded rows contributed 0.
    stats = jnp.sum(partials, axis=0)          # [2, Ep]
    mean = stats[0] / m                        # divide by true (unpadded) M
    var = stats[1] / m - mean * mean           # biased variance (BN training mode)
    # TODO(synk): E[y^2]-E[y]^2 in f32 can cancel when |mean| >> std; switch to
    # mean-shifted / Welford per-tile partials if that regime ever matters here.
    inv = jax.lax.rsqrt(var + EPS)
    scale = (gamma_p * inv).reshape(1, ep)
    shift = (beta_p - mean * gamma_p * inv).reshape(1, ep)

    # ---- Phase B: pure elementwise fused BN affine (no matmul redo) --------
    out = pl.pallas_call(
        _bn_apply_kernel,
        out_shape=jax.ShapeDtypeStruct((mp, ep), jnp.float32),
        grid=(n_tiles,),
        in_specs=[
            pl.BlockSpec((tm, ep), lambda i: (i, 0)),
            pl.BlockSpec((1, ep), lambda i: (0, 0)),
            pl.BlockSpec((1, ep), lambda i: (0, 0)),
        ],
        out_specs=pl.BlockSpec((tm, ep), lambda i: (i, 0)),
        compiler_params=cparams,
    )(y_flat, scale, shift)

    # [Mp, Ep] -> [M, E] -> [N, OH, OW, E] -> NCHW to match the PyTorch module.
    # (If the consumer immediately flattens to [N, OH*OW, E], this transpose —
    #  a full extra HBM round trip — can be skipped: out[:m, :e] already has
    #  that layout.)
    y = out[:m, :e].reshape(n, oh, ow, e).transpose(0, 3, 1, 2)
    return y


def overlap_patch_embed(x, weight, bias, gamma, beta, patch_size, stride):
    """x: [N, C, H, W] (NCHW, like PyTorch). Returns (y_nchw, H_out, W_out)."""
    del bias  # cancels exactly under training-mode BatchNorm (see note above)
    _, _, h, w = x.shape
    pad = patch_size // 2
    oh = (h + 2 * pad - patch_size) // stride + 1
    ow = (w + 2 * pad - patch_size) // stride + 1
    y = _overlap_patch_embed_impl(x, weight, gamma, beta, patch_size, stride)
    return y, oh, ow


# ----------------------------------------------------------------------------
# Reference & test
# ----------------------------------------------------------------------------
def _reference(x, weight, bias, gamma, beta, patch_size, stride):
    pad = patch_size // 2
    y = jax.lax.conv_general_dilated(
        x, weight, window_strides=(stride, stride),
        padding=((pad, pad), (pad, pad)),
        dimension_numbers=("NCHW", "OIHW", "NCHW"))
    y = y + bias.reshape(1, -1, 1, 1)
    mean = jnp.mean(y, axis=(0, 2, 3), keepdims=True)
    var = jnp.mean((y - mean) ** 2, axis=(0, 2, 3), keepdims=True)
    yn = (y - mean) * jax.lax.rsqrt(var + EPS)
    return yn * gamma.reshape(1, -1, 1, 1) + beta.reshape(1, -1, 1, 1)


if __name__ == "__main__":
    # Small, module-consistent shapes: batch=2, in_chans=4, spatial=16,
    # embed_dim=32, patch_size=7, stride=4  -> output [2, 32, 4, 4].
    N, C, H, W = 2, 4, 16, 16
    E, P, S = 32, 7, 4

    key = jax.random.PRNGKey(0)
    k_x, k_w, k_b, k_g, k_be = jax.random.split(key, 5)
    x = jax.random.normal(k_x, (N, C, H, W), dtype=jnp.float32)
    weight = jax.random.normal(k_w, (E, C, P, P), dtype=jnp.float32) * 0.05
    bias = jax.random.normal(k_b, (E,), dtype=jnp.float32) * 0.05
    gamma = 1.0 + 0.1 * jax.random.normal(k_g, (E,), dtype=jnp.float32)
    beta = 0.1 * jax.random.normal(k_be, (E,), dtype=jnp.float32)

    y, oh, ow = overlap_patch_embed(x, weight, bias, gamma, beta, P, S)
    jax.block_until_ready(y)

    assert y.shape == (N, E, oh, ow), y.shape

    y_ref = _reference(x, weight, bias, gamma, beta, P, S)
    # bf16 matmul operands / bf16 y intermediate (f32 accumulation & BN math)
    # vs f32 reference -> ~1e-2 level error on normalized outputs.
    assert jnp.allclose(y, y_ref, atol=2e-2, rtol=2e-2), \
        float(jnp.max(jnp.abs(y - y_ref)))

    print("KERNEL_OK")
</pallas_src>

<mosaic_0001>
module attributes {stable_mosaic.version = 11 : i64} {
  func.func @_bn_apply_kernel(%arg0: i32, %arg1: memref<16x128xbf16, #tpu.memory_space<vmem>>, %arg2: memref<1x128xf32, #tpu.memory_space<vmem>>, %arg3: memref<1x128xf32, #tpu.memory_space<vmem>>, %arg4: memref<16x128xf32, #tpu.memory_space<vmem>>) attributes {dimension_semantics = [#tpu.dimension_semantics<parallel>], iteration_bounds = array<i64: 2>, scalar_prefetch = 0 : i64, scratch_operands = 0 : i64, tpu.core_type = #tpu.core_type<tc>, window_params = [{transform_indices = @transform_0, window_bounds = array<i64: 16, 128>}, {pipeline_mode = #tpu.pipeline_mode<synchronous>, transform_indices = @transform_1, window_bounds = array<i64: 1, 128>}, {pipeline_mode = #tpu.pipeline_mode<synchronous>, transform_indices = @transform_2, window_bounds = array<i64: 1, 128>}, {transform_indices = @transform_3, window_bounds = array<i64: 16, 128>}]} {
    %c0 = arith.constant 0 : index
    %c0_0 = arith.constant 0 : index
    %0 = vector.load %arg1[%c0, %c0_0] : memref<16x128xbf16, #tpu.memory_space<vmem>>, vector<16x128xbf16>
    %1 = arith.extf %0 : vector<16x128xbf16> to vector<16x128xf32>
    %c0_1 = arith.constant 0 : index
    %c0_2 = arith.constant 0 : index
    %2 = vector.load %arg2[%c0_1, %c0_2] : memref<1x128xf32, #tpu.memory_space<vmem>>, vector<1x128xf32>
    %3 = vector.broadcast %2 : vector<1x128xf32> to vector<16x128xf32>
    %4 = arith.mulf %1, %3 : vector<16x128xf32>
    %c0_3 = arith.constant 0 : index
    %c0_4 = arith.constant 0 : index
    %5 = vector.load %arg3[%c0_3, %c0_4] : memref<1x128xf32, #tpu.memory_space<vmem>>, vector<1x128xf32>
    %6 = vector.broadcast %5 : vector<1x128xf32> to vector<16x128xf32>
    %7 = arith.addf %4, %6 : vector<16x128xf32>
    %c0_5 = arith.constant 0 : index
    %c0_6 = arith.constant 0 : index
    %8 = vector.load %arg4[%c0_5, %c0_6] : memref<16x128xf32, #tpu.memory_space<vmem>>, vector<16x128xf32>
    tpu.vector_store %arg4[%c0_5, %c0_6], %7 {strides = array<i32>} : memref<16x128xf32, #tpu.memory_space<vmem>>, vector<16x128xf32>,
    return
  }
  func.func @transform_0(%arg0: i32) -> (i32, i32) {
    %c0_i32 = arith.constant 0 : i32
    %c0_i32_0 = arith.constant 0 : i32
    return %arg0, %c0_i32 : i32, i32
  }
  func.func @transform_1(%arg0: i32) -> (i32, i32) {
    %c0_i32 = arith.constant 0 : i32
    %c0_i32_0 = arith.constant 0 : i32
    %c0_i32_1 = arith.constant 0 : i32
    return %c0_i32, %c0_i32_0 : i32, i32
  }
  func.func @transform_2(%arg0: i32) -> (i32, i32) {
    %c0_i32 = arith.constant 0 : i32
    %c0_i32_0 = arith.constant 0 : i32
    %c0_i32_1 = arith.constant 0 : i32
    return %c0_i32, %c0_i32_0 : i32, i32
  }
  func.func @transform_3(%arg0: i32) -> (i32, i32) {
    %c0_i32 = arith.constant 0 : i32
    %c0_i32_0 = arith.constant 0 : i32
    return %arg0, %c0_i32 : i32, i32
  }
}

module attributes {stable_mosaic.version = 11 : i64} {
  func.func @_proj_stats_kernel(%arg0: i32, %arg1: memref<16x208xbf16, #tpu.memory_space<vmem>>, %arg2: memref<208x128xbf16, #tpu.memory_space<vmem>>, %arg3: memref<16x128xbf16, #tpu.memory_space<vmem>>, %arg4: memref<1x2x128xf32, #tpu.memory_space<vmem>>) attributes {dimension_semantics = [#tpu.dimension_semantics<parallel>], iteration_bounds = array<i64: 2>, scalar_prefetch = 0 : i64, scratch_operands = 0 : i64, tpu.core_type = #tpu.core_type<tc>, window_params = [{transform_indices = @transform_0, window_bounds = array<i64: 16, 208>}, {pipeline_mode = #tpu.pipeline_mode<synchronous>, transform_indices = @transform_1, window_bounds = array<i64: 208, 128>}, {transform_indices = @transform_2, window_bounds = array<i64: 16, 128>}, {transform_indices = @transform_3, window_bounds = array<i64: 1, 2, 128>}]} {
    %c0 = arith.constant 0 : index
    %c0_0 = arith.constant 0 : index
    %0 = vector.load %arg1[%c0, %c0_0] : memref<16x208xbf16, #tpu.memory_space<vmem>>, vector<16x208xbf16>
    %c0_1 = arith.constant 0 : index
    %c0_2 = arith.constant 0 : index
    %1 = vector.load %arg2[%c0_1, %c0_2] : memref<208x128xbf16, #tpu.memory_space<vmem>>, vector<208x128xbf16>
    %cst = arith.constant dense<0.000000e+00> : vector<16x128xf32>
    %2 = tpu.matmul %0, %1, %cst {dimension_numbers = #tpu.dot_dimension_numbers<[1], [0], [0], [1], [0, 0, 1, 1], [], []>} : vector<16x208xbf16>, vector<208x128xbf16>, vector<16x128xf32> -> vector<16x128xf32>
    %3 = arith.truncf %2 : vector<16x128xf32> to vector<16x128xbf16>
    %c0_3 = arith.constant 0 : index
    %c0_4 = arith.constant 0 : index
    %4 = vector.load %arg3[%c0_3, %c0_4] : memref<16x128xbf16, #tpu.memory_space<vmem>>, vector<16x128xbf16>
    tpu.vector_store %arg3[%c0_3, %c0_4], %3 {strides = array<i32>} : memref<16x128xbf16, #tpu.memory_space<vmem>>, vector<16x128xbf16>,
    %cst_5 = arith.constant dense<0.000000e+00> : vector<128xf32>
    %5 = vector.multi_reduction <add>, %2, %cst_5 [0] : vector<16x128xf32> to vector<128xf32>
    %6 = vector.shape_cast %5 : vector<128xf32> to vector<1x128xf32>
    %c0_6 = arith.constant 0 : index
    %c0_7 = arith.constant 0 : index
    %c0_8 = arith.constant 0 : index
    %7 = vector.load %arg4[%c0_6, %c0_7, %c0_8] : memref<1x2x128xf32, #tpu.memory_space<vmem>>, vector<1x1x128xf32>
    %8 = vector.shape_cast %7 : vector<1x1x128xf32> to vector<1x128xf32>
    %9 = vector.shape_cast %6 : vector<1x128xf32> to vector<1x1x128xf32>
    tpu.vector_store %arg4[%c0_6, %c0_7, %c0_8], %9 {strides = array<i32>} : memref<1x2x128xf32, #tpu.memory_space<vmem>>, vector<1x1x128xf32>,
    %10 = arith.mulf %2, %2 : vector<16x128xf32>
    %cst_9 = arith.constant dense<0.000000e+00> : vector<128xf32>
    %11 = vector.multi_reduction <add>, %10, %cst_9 [0] : vector<16x128xf32> to vector<128xf32>
    %12 = vector.shape_cast %11 : vector<128xf32> to vector<1x128xf32>
    %c0_10 = arith.constant 0 : index
    %c1 = arith.constant 1 : index
    %c0_11 = arith.constant 0 : index
    %13 = vector.load %arg4[%c0_10, %c1, %c0_11] : memref<1x2x128xf32, #tpu.memory_space<vmem>>, vector<1x1x128xf32>
    %14 = vector.shape_cast %13 : vector<1x1x128xf32> to vector<1x128xf32>
    %15 = vector.shape_cast %12 : vector<1x128xf32> to vector<1x1x128xf32>
    tpu.vector_store %arg4[%c0_10, %c1, %c0_11], %15 {strides = array<i32>} : memref<1x2x128xf32, #tpu.memory_space<vmem>>, vector<1x1x128xf32>,
    return
  }
  func.func @transform_0(%arg0: i32) -> (i32, i32) {
    %c0_i32 = arith.constant 0 : i32
    %c0_i32_0 = arith.constant 0 : i32
    return %arg0, %c0_i32 : i32, i32
  }
  func.func @transform_1(%arg0: i32) -> (i32, i32) {
    %c0_i32 = arith.constant 0 : i32
    %c0_i32_0 = arith.constant 0 : i32
    %c0_i32_1 = arith.constant 0 : i32
    return %c0_i32, %c0_i32_0 : i32, i32
  }
  func.func @transform_2(%arg0: i32) -> (i32, i32) {
    %c0_i32 = arith.constant 0 : i32
    %c0_i32_0 = arith.constant 0 : i32
    return %arg0, %c0_i32 : i32, i32
  }
  func.func @transform_3(%arg0: i32) -> (i32, i32, i32) {
    %c0_i32 = arith.constant 0 : i32
    %c0_i32_0 = arith.constant 0 : i32
    %c0_i32_1 = arith.constant 0 : i32
    return %arg0, %c0_i32, %c0_i32_0 : i32, i32, i32
  }
}

</mosaic_0001>

<bundles_post_ra>
// kernel: _overlap_patch_embed_impl.3
= control target key start
LH: loop header
LB: loop body
LE: loop exit
PB: predicated region body
PF: predicated region fallthrough
CT: control target
= control target key end

     0   :  { %8 = vsyncpa [#allocation3], 0  ;;  %s527_s0 = inlined_call_operand.vmem [shape: bf16[32,128], index: 0, kind: input, shape index: {}]   ;;  %s528_s1 = inlined_call_operand.vmem [shape: f32[1,128], index: 1, kind: input, shape index: {}]   ;;  %s529_s2 = inlined_call_operand.vmem [shape: f32[1,128], index: 2, kind: input, shape index: {}]   ;;  %s530_s3 = inlined_call_operand.hbm [shape: f32[32,128], index: 3, kind: output, shape index: {}]  }
   0x1   :  { %10 = vsyncpa [#allocation3 + $0x1], 0  ;;  %s419_s12 = smov 0   ;;  %s421_s13 = smov 0  }
   0x2   :  { %s423_s14 = smov 0   ;;  %s425_s15 = smov 0  }
   0x3 LB: > { %s440_s16 = sadd.s32 4294967295, %s394_s15   ;;  %s272_s17 = sadd.s32 4294967294, %s394_s15   ;;  %s394_s15 = sphi %s425_s15, %s536_s15   ;;  %s390_s14 = sphi %s423_s14, %s535_s14   ;;  %s386_s13 = sphi %s421_s13, %s534_s13   ;;  %s382_s12 = sphi %s419_s12, %s533_s12  }
   0x4   : > { %s444_s18 = sadd.s32 1, %s394_s15   ;;  %s91_s19 = sadd.s32 1, %s390_s14 }
   0x5   : > { %s88_s20 = ssub.s32 %s394_s15, %s444_s18  ;;  %p101_p0 = scmp.ne.s32.totalorder %s390_s14, %s386_s13 }
   0x6   : > { %p89_p1 = scmp.eq.s32.totalorder %s88_s20, 0  ;;  %p102_p2 = scmp.eq.s32.totalorder %s440_s16, 1 }
   0x7   : > { %p107_p3 = scmp.ne.s32.totalorder %s386_s13, %s382_s12  ;;  %p108_p4 = scmp.eq.s32.totalorder %s272_s17, 1 }
   0x8   : > { %s455_s21 = scalar_select %p89_p1, %s390_s14, %s91_s19  }
   0x9   : > { %p457_p5 = por %p102_p2, %p101_p0  ;;  %p461_p6 = por %p108_p4, %p107_p3 }
   0xa   : > { %p275_p7 = scmp.ge.s32.totalorder %s394_s15, 1  ;;  %p141_p8 = scmp.lt.s32.totalorder %s394_s15, 3 }
   0xc   : > { %p142_p9 = pnand %p275_p7, %p141_p8 }
   0xd   : > { %s162_s24 = sand.u32 (!%p142_p9), 1, %s386_s13   ;;  %s277_s25 = sshll.u32 (!%p142_p9), %s440_s16, 1  ;;  %v279_v1 = vld [vmem:[%s528_s1] ss:$0 sm:$0xff] (!%p142_p9) }
   0xe   : > { %145 = sbr.rel (%p142_p9) target bundleno = 46 (0x2e), region = 32  ;;  %p166_p10 = scmp.lt.s32.totalorder (!%p142_p9), %s277_s25, 3  ;;  %v280_v4 = vld [vmem:[%s529_s2] ss:$0 sm:$0xff] (!%p142_p9) }
   0xf   : > { %s276_s26 = sshll.u32 (!%p142_p9), %s162_s24, 4  ;;  %s286_s8 = sshll.u32 (!%p142_p9), %s440_s16, 8 }
  0x10   : > { %s164_s6 = scalar_lea.vmem (!%p142_p9), [#allocation2], %s276_s26  ;;  %s484_s19 = scalar_lea.hbm (!%p142_p9), %s530_s3, %s286_s8 }
  0x11   : > { %s210_s7 = sshll.u32 (!%p142_p9), %s164_s6, 4  ;;  %s486_s16 = scalar_lea.sflag (!%p142_p9), [#allocation3], %s162_s24  ;;  %s479_s7 = int_to_ptr.vmem [resolvable:$true] %s210_s7 }
  0x12   : > { %s332_s20 = scalar_lea.vmem (!%p142_p9), %s479_s7, 256 }
  0x13   : > { %p333_p11 = scmp.ne.s32.totalorder (!%p142_p9), %s479_s7, %s332_s20 }
  0x15   : > { %s538_s25 = smov (!%p166_p10, %s277_s25), 3  ;;  %p334_p12 = pnand %p333_p11, %p457_p5 }
  0x16   : > { %s278_s27 = sshll.u32 %s538_s25, 2  ;;  %s396_s25 = smov [#allocation2]  }
  0x17   : > { %s169_s30 = scalar_lea.vmem %s527_s0, %s278_s27  ;;  %p335_p13 = pneg %p334_p12 }
  0x18   : > { %v288_v0 = vld [vmem:[%s169_s30] sm:$0xff]   ;;  %s336_s26 = sshll.u32 %s396_s25, 4  ;;  %s337_s26 = int_to_ptr.vmem [resolvable:$false] %s336_s26 }
  0x19   : > { %v289_v2 = vunpack.c.l.bf16 %v288_v0  ;;  %v290_v3 = vunpack.c.h.bf16 %v288_v0  ;;  %s338_s27 = scalar_lea.vmem %s337_s26, 512  ;;  %p339_p0 = scmp.lt.s32.totalorder %s479_s7, %s337_s26 }
  0x1a   : > { %p340_p1 = scmp.lt.s32.totalorder %s338_s27, %s332_s20 }
  0x1b   : > { %v183_v5 = vmul.f32 %v289_v2, %v279_v1  ;;  %v184_v6 = vmul.f32 %v290_v3, %v279_v1 }
  0x1c   : > { %p341_p2 = por %p340_p1, %p339_p0 }
  0x1d   : > { %v192_v7 = vadd.f32 %v280_v4, %v183_v5  ;;  %v193_v8 = vadd.f32 %v280_v4, %v184_v6 }
  0x1e   : > { %p342_p3 = pnand %p341_p2, %p335_p13 }
  0x1f   : > { %194 = vst [vmem:[%s164_s6] sm:$0xff] %v192_v7  ;;  %195 = vst [vmem:[%s164_s6 + $0x8] sm:$0xff] %v193_v8 }
  0x20   : > { %345 = shalt.err (!%p342_p3)
}
  0x21   : > { %s346_s24 = scalar_lea.hbm %s484_s19, 256  ;;  %s350_s30 = scalar_lea.hbm %s530_s3, 512 }
  0x22   : > { %p347_p4 = scmp.ne.s32.totalorder %s484_s19, %s346_s24  ;;  %p351_p9 = scmp.lt.u32.totalorder %s484_s19, %s530_s3 }
  0x23   : > { %p352_p10 = scmp.lt.u32.totalorder %s350_s30, %s346_s24  ;;  %p354_p12 = scmp.lt.u32.totalorder %s346_s24, %s484_s19 }
  0x24   : > { %p348_p7 = pnand %p347_p4, %p457_p5 }
  0x25   : > { %p353_p11 = por %p352_p10, %p351_p9 }
  0x26   : > { %p349_p8 = pneg %p348_p7 }
  0x27   : > { %p355_p13 = por %p354_p12, %p353_p11 }
  0x29   : > { %p356_p0 = pnand %p355_p13, %p349_p8 }
  0x2b   : > { %359 = shalt.err (!%p356_p0)
}
  0x2c   : > { %s397_s6 = smov 128   ;;  %s398_s8 = smov 8  }
  0x2d   : > { %291 = dma.vmem_to_hbm [thread:$0]  (%p457_p5), %s479_s7, 256, %s484_s19, %s486_s16, %s397_s6, %s397_s6, %s398_s8  }
  0x2e PF: > { %p297_p1 = scmp.ge.s32.totalorder %s394_s15, 2  ;;  %s225_s9 = sand.u32 1, %s382_s12  }
  0x2f   : > { %s226_s10 = scalar_lea.sflag [#allocation3], %s225_s9 }
  0x30   : > { %p294_p2 = pnand %p297_p1, %p461_p6 }
  0x32   : > { %377 = dma.done.wait (!%p294_p2), %s226_s10, 256  }
  0x33   : > { %379 = vsyncadd (!%p294_p2), %s226_s10, 4294967040  ;;  %p13_p3 = scmp.ge.s32.totalorder %s444_s18, 4   ;;  %s533_s12 = smov %s386_s13 }
  0x34   : > { %s534_s13 = smov %s390_s14  ;;  %s535_s14 = smov %s455_s21 }
  0x35   : > { %s536_s15 = smov %s444_s18  ;;  %15 = sbr.rel (!%p13_p3) target bundleno = 3 (0x3), region = 67 }
  0x3c   :  { %231 = vsyncpa [#allocation3], 1 }
  0x3d   :  { %233 = vsyncpa [#allocation3 + $0x1], 1 }

// kernel: _overlap_patch_embed_impl.2
= control target key start
LH: loop header
LB: loop body
LE: loop exit
PB: predicated region body
PF: predicated region fallthrough
CT: control target
= control target key end

     0   :  { %s557_s12 = smov 0   ;;  %s629_s0 = inlined_call_operand.vmem [shape: bf16[32,208], index: 0, kind: input, shape index: {}]   ;;  %s630_s1 = inlined_call_operand.vmem [shape: bf16[208,128], index: 1, kind: input, shape index: {}]   ;;  %s631_s2 = inlined_call_operand.vmem [shape: bf16[32,128], index: 2, kind: output, shape index: {0}]   ;;  %s632_s3 = inlined_call_operand.vmem [shape: f32[2,2,128], index: 3, kind: output, shape index: {1}]  }
   0x1 LB: > { %s563_s13 = sadd.s32 4294967295, %s534_s12   ;;  %p468_p0 = scmp.ge.s32.totalorder %s534_s12, 1  ;;  %s534_s12 = sphi %s557_s12, %s14_s12  }
   0x2   : > { %p142_p1 = scmp.lt.s32.totalorder %s534_s12, 3 }
   0x4   : > { %p143_p2 = pnand %p468_p0, %p142_p1 }
   0x5   : > { %v512_v0 = vld [vmem:[%s630_s1] sm:$0xff] (!%p143_p2)   ;;  %v536_v1 = vmov (!%p143_p2), 0   ;;  %s469_s16 = sshll.u32 (!%p143_p2), %s563_s13, 1  ;;  %v513_v2 = vld [vmem:[%s630_s1 + $0x8] sm:$0xff] (!%p143_p2)   ;;  %v514_v3 = vld [vmem:[%s630_s1 + $0x10] sm:$0xff] (!%p143_p2)   ;;  %vm304_vm0 = vcmask (!%p143_p2), 654336  }
   0x6   : > { %146 = sbr.rel (%p143_p2) target bundleno = 289 (0x121), region = 28  ;;  %308 = vmatprep.subr.bf16.mxu0 (!%p143_p2), %v536_v1  ;;  %p172_p3 = scmp.lt.s32.totalorder (!%p143_p2), %s469_s16, 3  ;;  %v515_v4 = vld [vmem:[%s630_s1 + $0x18] sm:$0xff] (!%p143_p2)   ;;  %v516_v5 = vld [vmem:[%s630_s1 + $0x20] sm:$0xff] (!%p143_p2)   ;;  %v517_v7 = vld [vmem:[%s630_s1 + $0x28] sm:$0xff] (!%p143_p2)  }
   0x7   : > { %309 = vmatpush1.bf16.msra.mxu0 (!%p143_p2), %v512_v0  ;;  %v518_v8 = vld [vmem:[%s630_s1 + $0x30] sm:$0xff] (!%p143_p2)   ;;  %v519_v9 = vld [vmem:[%s630_s1 + $0x38] sm:$0xff] (!%p143_p2)   ;;  %v520_v10 = vld [vmem:[%s630_s1 + $0x40] sm:$0xff] (!%p143_p2)   ;;  %p184_p4 = scmp.lt.s32.totalorder (!%p143_p2), %s563_s13, 1 }
   0x8   : > { %310 = vmatprep.subr.bf16.mxu0 (!%p143_p2), %v536_v1  ;;  %v521_v11 = vld [vmem:[%s630_s1 + $0x48] sm:$0xff] (!%p143_p2)   ;;  %v522_v12 = vld [vmem:[%s630_s1 + $0x50] sm:$0xff] (!%p143_p2)   ;;  %v523_v13 = vld [vmem:[%s630_s1 + $0x58] sm:$0xff] (!%p143_p2)  }
   0x9   : > { %v524_v14 = vld [vmem:[%s630_s1 + $0x60] sm:$0xff] (!%p143_p2)  }
   0xb   : > { %311 = vmatpush1.bf16.msra.mxu0 (!%p143_p2), %v513_v2 }
   0xc   : > { %312 = vmatprep.subr.bf16.mxu0 (!%p143_p2), %v536_v1 }
   0xd   : > { %s634_s16 = smov (!%p172_p3, %s469_s16), 3  ;;  %s636_s13 = smov (!%p184_p4, %s563_s13), 1 }
   0xe   : > { %s495_s21 = sshll.u32 %s634_s16, 3 }
   0xf   : > { %313 = vmatpush1.bf16.msra.mxu0 %v514_v3  ;;  %s586_s26 = scalar_lea.vmem %s629_s0, %s495_s21  ;;  %s473_s21 = sshll.u32 %s634_s16, 2 }
  0x10   : > { %314 = vmatprep.subr.bf16.mxu0 %v536_v1  ;;  %v527_v6 = vld [vmem:[%s586_s26 + $0x4] ss:$8 sps:$4 sm:$0xff]   ;;  %v525_v15 = vld [vmem:[%s586_s26] ss:$8 sps:$4 sm:$0xff]   ;;  %s182_s24 = scalar_lea.vmem %s631_s2, %s473_s21  ;;  %s474_s16 = sshll.u32 %s636_s13, 1 }
  0x11   : > { %490 = vmatprep.mubr.msk.bf16.mxu0 %vm304_vm0, %v527_v6  ;;  %s187_s27 = scalar_lea.vmem %s632_s3, %s474_s16 }
  0x13   : > { %315 = vmatpush1.bf16.msra.mxu0 %v515_v4 }
  0x14   : > { %316 = vmatprep.subr.bf16.mxu0 %v536_v1 }
  0x17   : > { %317 = vmatpush1.bf16.msra.mxu0 %v516_v5 }
  0x18   : > { %318 = vmatprep.subr.bf16.mxu0 %v536_v1 }
  0x1b   : > { %319 = vmatpush1.bf16.msra.mxu0 %v517_v7 }
  0x1c   : > { %320 = vmatprep.subr.bf16.mxu0 %v536_v1 }
  0x1f   : > { %321 = vmatpush1.bf16.msra.mxu0 %v518_v8 }
  0x20   : > { %322 = vmatprep.subr.bf16.mxu0 %v536_v1 }
  0x23   : > { %323 = vmatpush1.bf16.msra.mxu0 %v519_v9 }
  0x24   : > { %324 = vmatprep.subr.bf16.mxu0 %v536_v1 }
  0x27   : > { %325 = vmatpush1.bf16.msra.mxu0 %v520_v10 }
  0x28   : > { %326 = vmatprep.subr.bf16.mxu0 %v536_v1 }
  0x2b   : > { %327 = vmatpush1.bf16.msra.mxu0 %v521_v11 }
  0x2c   : > { %328 = vmatprep.subr.bf16.mxu0 %v536_v1 }
  0x2f   : > { %329 = vmatpush1.bf16.msra.mxu0 %v522_v12 }
  0x30   : > { %330 = vmatprep.subr.bf16.mxu0 %v536_v1 }
  0x33   : > { %331 = vmatpush1.bf16.msra.mxu0 %v523_v13 }
  0x34   : > { %332 = vmatprep.subr.bf16.mxu0 %v536_v1 }
  0x37   : > { %333 = vmatpush1.bf16.msra.mxu0 %v524_v14 }
  0x3a   : > { %341 = vmatmul.mubr.bf16.vlgmr.msra.gmra.mrb[0].mxu0 %v525_v15 }
 0x10d   : > { %v342_v16 = vpop.f32.mrb[0].mxu0 }
 0x10e   : > { %v344_v17 = vpop.f32.mrb[1].mxu0  ;;  %v367_v19 = vmul.f32 %v342_v16, %v342_v16 }
 0x10f   : > { %v345_v18 = vpop.f32.mrb[2].mxu0 }
 0x110   : > { %v501_v20 = vpack.c.bf16 %v345_v18, %v342_v16  ;;  %v359_v21 = vadd.f32 %v345_v18, %v342_v16  ;;  %v368_v22 = vmul.f32 %v345_v18, %v345_v18  ;;  %v347_v23 = vpop.f32.mrb[3].mxu0 }
 0x112   : > { %502 = vst [vmem:[%s182_s24] sm:$0xff] %v501_v20   ;;  %v360_v24 = vrot.slane %v359_v21, 4  ;;  %v369_v25 = vadd.f32 %v368_v22, %v367_v19 }
 0x114   : > { %v361_v26 = vadd.f32 %v360_v24, %v359_v21  ;;  %v370_v27 = vrot.slane %v369_v25, 4 }
 0x116   : > { %v362_v28 = vrot.slane %v361_v26, 2  ;;  %v371_v29 = vadd.f32 %v370_v27, %v369_v25 }
 0x118   : > { %v363_v30 = vadd.f32 %v362_v28, %v361_v26  ;;  %v372_v31 = vrot.slane %v371_v29, 2 }
 0x11a   : > { %v364_v32 = vrot.slane %v363_v30, 1  ;;  %v373_v33 = vadd.f32 %v372_v31, %v371_v29 }
 0x11c   : > { %v365_v34 = vadd.f32 %v364_v32, %v363_v30  ;;  %v374_v35 = vrot.slane %v373_v33, 1 }
 0x11e   : > { %366 = vst [vmem:[%s187_s27] sm:$0x1] %v365_v34  ;;  %v375_v36 = vadd.f32 %v374_v35, %v373_v33 }
 0x120   : > { %376 = vst [vmem:[%s187_s27 + $0x1] sm:$0x1] %v375_v36 }
 0x121 PF: > { %s14_s12 = sadd.s32 1, %s534_s12  }
 0x122   : > { %p11_p5 = scmp.ge.s32.totalorder %s14_s12, 4  }
 0x124   :  { %13 = sbr.rel (!%p11_p5) target bundleno = 1 (0x1), region = 70 }

</bundles_post_ra>
